<compile_context>
chip_gen: v5e
topology: v5e:2x2
jax: 0.10.0
libtpu: 0.0.40
codegen_flags: <defaults>
</compile_context>

<pallas_src>
import jax
import jax.numpy as jnp
from jax.experimental import pallas as pl
from jax.experimental.pallas import tpu as pltpu

IN_F = 2
HID_F = 5
OUT_F = 1

# Rows of 128 lanes per grid step.  x tile = IN_F*TR*128*4B = 2 MiB at TR=2048.
_MAX_TILE_ROWS = 2048


def _round_up(a, m):
    return ((a + m - 1) // m) * m


def circle_fused_kernel(p_ref, x_ref, o_ref):
    # p_ref: SMEM (3,) f32 = [W0, W1, b] of the folded affine map.
    # x_ref: VMEM (IN_F, TR, 128) -- batch split over (sublane, lane), dense vregs.
    # o_ref: VMEM (TR, 128)       -- lane/sublane-dense, unmasked vector stores.
    w0 = p_ref[0]
    w1 = p_ref[1]
    b = p_ref[2]
    x0 = x_ref[0]                  # (TR, 128)
    x1 = x_ref[1]                  # (TR, 128)
    o_ref[...] = (x0 * w0 + x1 * w1 + b).astype(o_ref.dtype)


@jax.jit
def circle_model_v0(x, w1, b1, w2, b2):
    """Forward pass of CircleModelV0: layer_2(layer_1(x)) -> raw logits.

    x : (N, 2) float32
    w1: (2, 5), b1: (1, 5), w2: (5, 1), b2: (1, 1)   (stored [in, out])
    returns (N, 1) float32
    """
    n = x.shape[0]
    assert x.shape[1] == IN_F

    # Fold the two affine layers once (exact: no nonlinearity between them).
    w_fused = (w1 @ w2).reshape(IN_F)                              # (2,)
    b_fused = (b1 @ w2 + b2).reshape(OUT_F)                        # (1,)
    params = jnp.concatenate([w_fused, b_fused]).astype(jnp.float32)  # (3,)

    # ---- Tiling: batch -> (rows, 128), rows on sublanes, 128 on lanes -------
    r = pl.cdiv(n, 128)                       # 128-lane rows needed
    if r <= 8:
        tr = r                                # single full-extent block (toy sizes)
    else:
        # >= 4 grid steps (feeds both v7x TensorCores + pipelining), TR % 8 == 0.
        tr = min(_MAX_TILE_ROWS, _round_up(pl.cdiv(r, 4), 8))
    r_pad = _round_up(r, tr)
    n_pad = r_pad * 128

    # Single layout pass: transpose + pad + reshape fuse into one copy under jit.
    xt = jnp.pad(jnp.transpose(x.astype(jnp.float32)), ((0, 0), (0, n_pad - n)))
    xt = xt.reshape(IN_F, r_pad, 128)         # (2, r_pad, 128) feature-major

    grid = (r_pad // tr,)
    out = pl.pallas_call(
        circle_fused_kernel,
        out_shape=jax.ShapeDtypeStruct((r_pad, 128), jnp.float32),
        grid_spec=pltpu.PrefetchScalarGridSpec(
            num_scalar_prefetch=0,
            grid=grid,
            in_specs=[
                # 3 folded scalars -> SMEM (no padded VMEM tile, no DMA stream).
                pl.BlockSpec(memory_space=pltpu.MemorySpace.SMEM),
                # x tile: (IN_F, TR, 128) -- dense (8,128) vregs.
                pl.BlockSpec((IN_F, tr, 128), lambda i: (0, i, 0)),
            ],
            out_specs=pl.BlockSpec((tr, 128), lambda i: (i, 0)),
        ),
        compiler_params=pltpu.CompilerParams(
            dimension_semantics=("parallel",),
        ),
    )(params, xt)

    # Contiguous reshape + row slice (near-free); padded tail rows are dropped.
    return out.reshape(n_pad, OUT_F)[:n]


def init_params(key):
    """Deterministic init mimicking PyTorch nn.Linear default U[-1/sqrt(fan_in), 1/sqrt(fan_in)]."""
    k1, k2, k3, k4 = jax.random.split(key, 4)
    bound1 = 1.0 / (IN_F ** 0.5)
    bound2 = 1.0 / (HID_F ** 0.5)
    # stored as [in, out] (transposed w.r.t. PyTorch's [out, in])
    w1 = jax.random.uniform(k1, (IN_F, HID_F), jnp.float32, -bound1, bound1)
    b1 = jax.random.uniform(k2, (1, HID_F), jnp.float32, -bound1, bound1)
    w2 = jax.random.uniform(k3, (HID_F, OUT_F), jnp.float32, -bound2, bound2)
    b2 = jax.random.uniform(k4, (1, OUT_F), jnp.float32, -bound2, bound2)
    return w1, b1, w2, b2


if __name__ == "__main__":
    key = jax.random.PRNGKey(0)
    kx, kp = jax.random.split(key)

    # Non-multiple of 128 -> exercises padding, ragged tail, and a 2-step grid.
    N = 2000
    x = jax.random.normal(kx, (N, IN_F), dtype=jnp.float32)
    w1, b1, w2, b2 = init_params(kp)

    out = circle_model_v0(x, w1, b1, w2, b2)
    out = jax.block_until_ready(out)

    # Cross-check against plain JAX reference (unfused two-layer form).
    ref = (x @ w1 + b1) @ w2 + b2
    assert out.shape == (N, OUT_F)
    assert jnp.allclose(out, ref, atol=1e-5, rtol=1e-5)

    print("KERNEL_OK")
</pallas_src>

<mosaic_0001>
module attributes {stable_mosaic.version = 11 : i64} {
  func.func @circle_fused_kernel(%arg0: i32, %arg1: memref<3xf32, #tpu.memory_space<smem>>, %arg2: memref<2x8x128xf32, #tpu.memory_space<vmem>>, %arg3: memref<8x128xf32, #tpu.memory_space<vmem>>) attributes {dimension_semantics = [#tpu.dimension_semantics<parallel>], iteration_bounds = array<i64: 2>, scalar_prefetch = 0 : i64, scratch_operands = 0 : i64, tpu.core_type = #tpu.core_type<tc>, window_params = [{transform_indices = @transform_0, window_bounds = array<i64: 3>}, {transform_indices = @transform_1, window_bounds = array<i64: 2, 8, 128>}, {transform_indices = @transform_2, window_bounds = array<i64: 8, 128>}]} {
    %c0 = arith.constant 0 : index
    %0 = memref.load %arg1[%c0] : memref<3xf32, #tpu.memory_space<smem>>
    %c1 = arith.constant 1 : index
    %1 = memref.load %arg1[%c1] : memref<3xf32, #tpu.memory_space<smem>>
    %c2 = arith.constant 2 : index
    %2 = memref.load %arg1[%c2] : memref<3xf32, #tpu.memory_space<smem>>
    %c0_0 = arith.constant 0 : index
    %c0_1 = arith.constant 0 : index
    %c0_2 = arith.constant 0 : index
    %3 = vector.load %arg2[%c0_0, %c0_1, %c0_2] : memref<2x8x128xf32, #tpu.memory_space<vmem>>, vector<1x8x128xf32>
    %4 = vector.shape_cast %3 : vector<1x8x128xf32> to vector<8x128xf32>
    %c1_3 = arith.constant 1 : index
    %c0_4 = arith.constant 0 : index
    %c0_5 = arith.constant 0 : index
    %5 = vector.load %arg2[%c1_3, %c0_4, %c0_5] : memref<2x8x128xf32, #tpu.memory_space<vmem>>, vector<1x8x128xf32>
    %6 = vector.shape_cast %5 : vector<1x8x128xf32> to vector<8x128xf32>
    %7 = vector.broadcast %0 : f32 to vector<8x128xf32>
    %8 = arith.mulf %4, %7 : vector<8x128xf32>
    %9 = vector.broadcast %1 : f32 to vector<8x128xf32>
    %10 = arith.mulf %6, %9 : vector<8x128xf32>
    %11 = arith.addf %8, %10 : vector<8x128xf32>
    %12 = vector.broadcast %2 : f32 to vector<8x128xf32>
    %13 = arith.addf %11, %12 : vector<8x128xf32>
    %c0_6 = arith.constant 0 : index
    %c0_7 = arith.constant 0 : index
    %14 = vector.load %arg3[%c0_6, %c0_7] : memref<8x128xf32, #tpu.memory_space<vmem>>, vector<8x128xf32>
    tpu.vector_store %arg3[%c0_6, %c0_7], %13 {strides = array<i32>} : memref<8x128xf32, #tpu.memory_space<vmem>>, vector<8x128xf32>,
    return
  }
  func.func @transform_0(%arg0: i32) -> i32 {
    %c0_i32 = arith.constant 0 : i32
    %c0_i32_0 = arith.constant 0 : i32
    return %c0_i32 : i32
  }
  func.func @transform_1(%arg0: i32) -> (i32, i32, i32) {
    %c0_i32 = arith.constant 0 : i32
    %c0_i32_0 = arith.constant 0 : i32
    %c0_i32_1 = arith.constant 0 : i32
    return %c0_i32, %arg0, %c0_i32_0 : i32, i32, i32
  }
  func.func @transform_2(%arg0: i32) -> (i32, i32) {
    %c0_i32 = arith.constant 0 : i32
    %c0_i32_0 = arith.constant 0 : i32
    return %arg0, %c0_i32 : i32, i32
  }
}

</mosaic_0001>

<bundles_post_ra>
// kernel: circle_model_v0.1
= control target key start
LH: loop header
LB: loop body
LE: loop exit
PB: predicated region body
PF: predicated region fallthrough
CT: control target
= control target key end

     0   :  { %7 = vsyncpa [#allocation4], 0  ;;  %s587_s0 = inlined_call_operand.vmem [shape: f32[3], index: 0, kind: input, shape index: {}]   ;;  %s588_s1 = inlined_call_operand.vmem [shape: f32[2,16,128], index: 1, kind: input, shape index: {}]   ;;  %s589_s2 = inlined_call_operand.hbm [shape: f32[16,128], index: 2, kind: output, shape index: {}]  }
   0x1   :  { %8 = vsyncpa [#allocation3], 0 }
   0x2   :  { %10 = vsyncpa [#allocation3 + $0x1], 0  ;;  %s468_s9 = smov 0   ;;  %s470_s10 = smov 0  }
   0x3   :  { %s472_s11 = smov 0   ;;  %s474_s12 = smov 0  }
   0x4 LB: > { %s489_s13 = sadd.s32 4294967295, %s450_s12   ;;  %s302_s14 = sadd.s32 4294967294, %s450_s12   ;;  %s450_s12 = sphi %s474_s12, %s597_s12   ;;  %s446_s11 = sphi %s472_s11, %s596_s11   ;;  %s442_s10 = sphi %s470_s10, %s595_s10   ;;  %s438_s9 = sphi %s468_s9, %s594_s9  }
   0x5   : > { %s493_s15 = sadd.s32 1, %s450_s12   ;;  %s44_s16 = sadd.s32 1, %s446_s11 }
   0x6   : > { %s41_s17 = ssub.s32 %s450_s12, %s493_s15  ;;  %p51_p0 = scmp.ne.s32.totalorder %s446_s11, %s442_s10 }
   0x7   : > { %p42_p1 = scmp.eq.s32.totalorder %s41_s17, 0  ;;  %p52_p2 = scmp.eq.s32.totalorder %s450_s12, 0 }
   0x8   : > { %p81_p3 = scmp.eq.s32.totalorder %s489_s13, 1  ;;  %p86_p4 = scmp.ne.s32.totalorder %s442_s10, %s438_s9 }
   0x9   : > { %s505_s18 = scalar_select %p42_p1, %s446_s11, %s44_s16  }
   0xa   : > { %p507_p5 = por %p52_p2, %p51_p0  ;;  %p511_p6 = por %p81_p3, %p51_p0 }
   0xb   : > { %p87_p7 = scmp.eq.s32.totalorder %s302_s14, 1  ;;  %p303_p8 = scmp.ge.s32.totalorder %s450_s12, 1 }
   0xc   : > { %p94_p9 = scmp.lt.s32.totalorder %s450_s12, 3  ;;  %p333_p11 = scmp.eq.s32.totalorder %s489_s13, 0 }
   0xd   : > { %p517_p10 = por %p87_p7, %p86_p4  ;;  %s106_s25 = sshll.u32 %s587_s0, 4  ;;  %s107_s25 = int_to_ptr.vmem [resolvable:$true] %s106_s25 }
   0xe   : > { %p522_p12 = pnand %p303_p8, %p94_p9  ;;  %s452_s26 = smov [#allocation2]  }
   0xf   : > { %p305_p1 = scmp.ge.s32.totalorder %s450_s12, 2 }
  0x10   : > { %p325_p13 = pneg %p522_p12 }
  0x11   : > { %113 = sbr.rel (%p305_p1) target bundleno = 28 (0x1c), region = 20 }
  0x12   : > { %p326_p0 = pnand %p333_p11, %p325_p13 }
  0x14   : > { %328 = dma.vmem_to_smem (!%p326_p0), %s107_s25, 16, %s452_s26, [#allocation4]  }
  0x16   : > { %116 = sbr.rel (!%p507_p5) target bundleno = 28 (0x1c), region = 24  ;;  %s118_s27 = sand.u32 (%p507_p5), 1, %s446_s11  }
  0x17   : > { %s307_s28 = sshll.u32 (%p507_p5), %s450_s12, 3  ;;  %s306_s29 = sshll.u32 (%p507_p5), %s118_s27, 4 }
  0x18   : > { %s122_s4 = scalar_lea.vmem (%p507_p5), %s588_s1, %s307_s28  ;;  %s120_s5 = scalar_lea.vmem (%p507_p5), [#allocation5], %s306_s29 }
  0x19   : > { %v153_v0 = vld [vmem:[%s122_s4] sm:$0xff] (%p507_p5)  ;;  %v155_v1 = vld [vmem:[%s122_s4 + $0x10] sm:$0xff] (%p507_p5) }
  0x1a   : > { %154 = vst [vmem:[%s120_s5] sm:$0xff] (%p507_p5), %v153_v0 }
  0x1b   : > { %156 = vst [vmem:[%s120_s5 + $0x8] sm:$0xff] %v155_v1 }
  0x1c PF: > { %165 = sbr.rel (%p522_p12) target bundleno = 55 (0x37), region = 62 }
  0x21   : > { %429 = dma.done.wait (%p333_p11), [#allocation4], 16  }
  0x22   : > { %431 = vsyncadd (%p333_p11), [#allocation4], 4294967280  ;;  %s550_s6 = sand.u32 1, %s442_s10  }
  0x23   : > { %s310_s7 = sshll.u32 %s550_s6, 4 }
  0x24   : > { %s175_s8 = scalar_lea.vmem [#allocation5], %s310_s7 }
  0x25   : > { %179 = sfence }
  0x26   : > { %s195_s14 = sld [smem:[#allocation2]]  ;;  %s311_s17 = sshll.u32 %s550_s6, 3  ;;  %v198_v2 = vld [vmem:[%s175_s8] sm:$0xff]  ;;  %v314_v3 = vld [vmem:[%s175_s8 + $0x8] sm:$0xff] }
  0x27   : > { %s312_s16 = sld [smem:[#allocation2 + $0x1]]  ;;  %s316_s22 = sshll.u32 %s489_s13, 3 }
  0x28   : > { %s313_s19 = sld [smem:[#allocation2 + $0x2]]  ;;  %s220_s25 = scalar_lea.hbm %s589_s2, %s316_s22 }
  0x29   : > { %s194_s26 = scalar_lea.vmem [#allocation6], %s311_s17  ;;  %s224_s28 = sshll.u32 %s220_s25, 4  ;;  %s225_s28 = int_to_ptr.hbm [resolvable:$true] %s224_s28 }
  0x2a   : > { %s222_s27 = sshll.u32 %s194_s26, 4  ;;  %s210_s13 = scalar_lea.sflag [#allocation3], %s550_s6  ;;  %s223_s27 = int_to_ptr.vmem [resolvable:$true] %s222_s27 }
  0x2b   : > { %s398_s29 = sshra.s32 %s225_s28, 4  ;;  %s404_s5 = scalar_lea.hbm %s589_s2, 16  ;;  %s399_s29 = int_to_ptr.hbm [resolvable:$true] %s398_s29 }
  0x2c   : > { %v201_v4 = vstv %s195_s14  ;;  %s400_s30 = scalar_lea.hbm %s399_s29, 8  ;;  %p405_p5 = scmp.lt.s32.totalorder %s399_s29, %s589_s2 }
  0x2d   : > { %v202_v5 = vmul.f32 %v201_v4, %v198_v2  ;;  %v203_v6 = vstv %s312_s16  ;;  %p401_p2 = scmp.ne.s32.totalorder %s399_s29, %s400_s30  ;;  %p406_p7 = scmp.lt.s32.totalorder %s404_s5, %s400_s30 }
  0x2e   : > { %v204_v7 = vmul.f32 %v314_v3, %v203_v6  ;;  %v206_v8 = vstv %s313_s19 }
  0x2f   : > { %p402_p3 = pnand %p401_p2, %p511_p6  ;;  %p407_p8 = por %p406_p7, %p405_p5 }
  0x30   : > { %v205_v9 = vadd.f32 %v204_v7, %v202_v5 }
  0x31   : > { %p403_p4 = pneg %p402_p3 }
  0x32   : > { %v207_v10 = vadd.f32 %v206_v8, %v205_v9 }
  0x33   : > { %p408_p9 = pnand %p407_p8, %p403_p4 }
  0x34   : > { %208 = vst [vmem:[%s194_s26] sm:$0xff] %v207_v10 }
  0x35   : > { %411 = shalt.err (!%p408_p9)
}
  0x36   : > { %323 = dma.vmem_to_hbm [thread:$0]  (%p511_p6), %s223_s27, 128, %s225_s28, %s210_s13  }
  0x37 PF: > { %s236_s6 = sand.u32 1, %s438_s9   ;;  %p330_p11 = pnand %p305_p1, %p517_p10 }
  0x38   : > { %s237_s14 = scalar_lea.sflag [#allocation3], %s236_s6 }
  0x39   : > { %p331_p12 = pneg %p330_p11 }
  0x3b   : > { %433 = dma.done.wait (%p331_p12), %s237_s14, 128  }
  0x3c   : > { %435 = vsyncadd (%p331_p12), %s237_s14, 4294967168  ;;  %p13_p13 = scmp.ge.s32.totalorder %s493_s15, 4   ;;  %s594_s9 = smov %s442_s10 }
  0x3d   : > { %s595_s10 = smov %s446_s11  ;;  %s596_s11 = smov %s505_s18 }
  0x3e   : > { %s597_s12 = smov %s493_s15  ;;  %15 = sbr.rel (!%p13_p13) target bundleno = 4 (0x4), region = 112 }
  0x43   :  { %243 = vsyncpa [#allocation3], 1 }
  0x44   :  { %245 = vsyncpa [#allocation3 + $0x1], 1 }
  0x45   :  { %246 = vsyncpa [#allocation4], 1 }
  0x46   :  { %248 = vsyncpa [#allocation4 + $0x1], 1 }

</bundles_post_ra>
